<compile_context>
chip_gen: v6e
topology: v6e:2x2x1
jax: 0.10.0
libtpu: 0.0.40
codegen_flags: <defaults>
</compile_context>

<pallas_src>
import jax
import jax.numpy as jnp
from jax.experimental import pallas as pl
from jax.experimental.pallas import tpu as pltpu


def modrelu_kernel(re_ref, im_ref, thr_ref, ore_ref, oim_ref):
    re = re_ref[...]           # (tb, tf) float32
    im = im_ref[...]           # (tb, tf) float32
    thr = thr_ref[...]         # (1,  tf) float32, broadcasts over rows

    sq = re * re + im * im                    # |z|^2
    nonzero = sq > 0.0
    # Single EUP rsqrt; mod = sq * rsqrt(sq) == sqrt(sq) (and 0 when sq == 0).
    inv_mod = jax.lax.rsqrt(jnp.where(nonzero, sq, 1.0))
    mod = sq * inv_mod
    scale = jnp.maximum(mod + thr, 0.0)       # relu(|z| + threshold)
    factor = scale * inv_mod                  # scale / |z|

    # z == 0: angle = 0 -> exp(i*0) = 1 -> out = relu(threshold) + 0j
    ore_ref[...] = jnp.where(nonzero, re * factor, scale).astype(ore_ref.dtype)
    oim_ref[...] = jnp.where(nonzero, im * factor, 0.0).astype(oim_ref.dtype)


# ~2 MiB per f32 plane per block; 4 planes x double-buffering ~= 16 MiB VMEM.
_TARGET_BLOCK_ELEMS = 512 * 1024


def _choose_tiles(B, F):
    # Feature (lane) tile: whole F when modest, else a lane-dense 2048 stripe.
    tf = F if F <= 4096 else 2048
    # Row tile: as many rows as fit the element target, multiple of 8 sublanes.
    tb = max(8, (_TARGET_BLOCK_ELEMS // tf) // 8 * 8)
    if tb >= B:
        tb = B  # full dim is always a legal block shape
    return tb, tf


@jax.jit
def modrelu_planar(re, im, threshold):
    """Planar fast path: re, im float32 (B, F); threshold float32 (F,).

    Returns (out_re, out_im) float32 (B, F).  No real/imag split or recombine
    traffic -- use this entry point if activations are stored planar.
    """
    B, F = re.shape
    tb, tf = _choose_tiles(B, F)
    grid = (pl.cdiv(B, tb), pl.cdiv(F, tf))   # partial edge blocks are masked

    row_spec = pl.BlockSpec((tb, tf), lambda i, j: (i, j))
    thr_spec = pl.BlockSpec((1, tf), lambda i, j: (0, j))
    thr2d = threshold.astype(jnp.float32).reshape(1, F)

    nbytes = 4 * B * F
    cost = pl.CostEstimate(
        flops=10 * B * F,                    # mul/add/max/select per element
        transcendentals=B * F,               # one rsqrt per element
        bytes_accessed=4 * nbytes + 4 * F,   # 2 in + 2 out planes (+ threshold)
    )

    out_re, out_im = pl.pallas_call(
        modrelu_kernel,
        out_shape=(
            jax.ShapeDtypeStruct((B, F), jnp.float32),
            jax.ShapeDtypeStruct((B, F), jnp.float32),
        ),
        grid_spec=pltpu.PrefetchScalarGridSpec(
            num_scalar_prefetch=0,
            grid=grid,
            in_specs=[row_spec, row_spec, thr_spec],
            out_specs=[row_spec, row_spec],
        ),
        compiler_params=pltpu.CompilerParams(
            dimension_semantics=("parallel", "parallel"),
            # Above scoped defaults (16 MiB v5e / 32 MiB v6e,v7x), comfortably
            # below v7x's 64 MiB physical VMEM.
            vmem_limit_bytes=48 * 1024 * 1024,
        ),
        cost_estimate=cost,
    )(re.astype(jnp.float32), im.astype(jnp.float32), thr2d)

    return out_re, out_im


def modrelu(z: jax.Array, threshold: jax.Array) -> jax.Array:
    """z: (B, F) complex64, threshold: (F,) float32 -> (B, F) complex64.

    Matches ModReLU.forward.  The real/imag split and recombine here are extra
    HBM passes unavoidable in pure JAX (no complex dtype inside Pallas TPU);
    callers with planar storage should use modrelu_planar directly.
    """
    re = jnp.real(z).astype(jnp.float32)
    im = jnp.imag(z).astype(jnp.float32)
    out_re, out_im = modrelu_planar(re, im, threshold)
    return jax.lax.complex(out_re, out_im).astype(jnp.complex64)


def modrelu_reference(z, threshold):
    modulus = jnp.abs(z)
    angle = jnp.angle(z)
    return (jax.nn.relu(modulus + threshold) * jnp.exp(1j * angle)).astype(jnp.complex64)


def _run_case(key, B, F, init_threshold=0.5, zero_first=False):
    k1, k2 = jax.random.split(key)
    re = jax.random.normal(k1, (B, F), dtype=jnp.float32)
    im = jax.random.normal(k2, (B, F), dtype=jnp.float32)
    z = (re + 1j * im).astype(jnp.complex64)
    if zero_first:
        z = z.at[0, 0].set(0.0 + 0.0j)   # exercise the |z| == 0 branch
    threshold = jnp.full((F,), init_threshold, dtype=jnp.float32)

    out = jax.block_until_ready(modrelu(z, threshold))
    ref = modrelu_reference(z, threshold)
    assert out.shape == (B, F) and out.dtype == jnp.complex64
    # Tolerance absorbs EUP rsqrt drift vs the exact-sqrt reference.
    assert jnp.allclose(out, ref, atol=1e-4, rtol=1e-4), f"mismatch ({B},{F})"


if __name__ == "__main__":
    key = jax.random.PRNGKey(0)
    ka, kb = jax.random.split(key)

    # Small aligned demo shape (batch=16, in_features=128), includes z == 0.
    _run_case(ka, B=16, F=128, zero_first=True)
    # Unaligned shape to exercise the "full-dim block" path.
    _run_case(kb, B=10, F=200)

    print("KERNEL_OK")
</pallas_src>

<mosaic_0001>
module attributes {stable_mosaic.version = 11 : i64} {
  func.func @modrelu_kernel(%arg0: i32, %arg1: i32, %arg2: memref<16x128xf32, #tpu.memory_space<vmem>>, %arg3: memref<16x128xf32, #tpu.memory_space<vmem>>, %arg4: memref<1x128xf32, #tpu.memory_space<vmem>>, %arg5: memref<16x128xf32, #tpu.memory_space<vmem>>, %arg6: memref<16x128xf32, #tpu.memory_space<vmem>>) attributes {dimension_semantics = [#tpu.dimension_semantics<parallel>, #tpu.dimension_semantics<parallel>], iteration_bounds = array<i64: 1, 1>, scalar_prefetch = 0 : i64, scratch_operands = 0 : i64, tpu.core_type = #tpu.core_type<tc>, window_params = [{transform_indices = @transform_0, window_bounds = array<i64: 16, 128>}, {transform_indices = @transform_1, window_bounds = array<i64: 16, 128>}, {transform_indices = @transform_2, window_bounds = array<i64: 1, 128>}, {transform_indices = @transform_3, window_bounds = array<i64: 16, 128>}, {transform_indices = @transform_4, window_bounds = array<i64: 16, 128>}]} {
    %c0 = arith.constant 0 : index
    %c0_0 = arith.constant 0 : index
    %0 = vector.load %arg2[%c0, %c0_0] : memref<16x128xf32, #tpu.memory_space<vmem>>, vector<16x128xf32>
    %c0_1 = arith.constant 0 : index
    %c0_2 = arith.constant 0 : index
    %1 = vector.load %arg3[%c0_1, %c0_2] : memref<16x128xf32, #tpu.memory_space<vmem>>, vector<16x128xf32>
    %c0_3 = arith.constant 0 : index
    %c0_4 = arith.constant 0 : index
    %2 = vector.load %arg4[%c0_3, %c0_4] : memref<1x128xf32, #tpu.memory_space<vmem>>, vector<1x128xf32>
    %3 = arith.mulf %0, %0 : vector<16x128xf32>
    %4 = arith.mulf %1, %1 : vector<16x128xf32>
    %5 = arith.addf %3, %4 : vector<16x128xf32>
    %cst = arith.constant 0.000000e+00 : f32
    %6 = vector.broadcast %cst : f32 to vector<16x128xf32>
    %7 = arith.cmpf ogt, %5, %6 : vector<16x128xf32>
    %cst_5 = arith.constant 1.000000e+00 : f32
    %8 = vector.broadcast %cst_5 : f32 to vector<16x128xf32>
    %9 = arith.select %7, %5, %8 : vector<16x128xi1>, vector<16x128xf32>
    %10 = math.rsqrt %9 : vector<16x128xf32>
    %11 = arith.mulf %5, %10 : vector<16x128xf32>
    %12 = vector.broadcast %2 : vector<1x128xf32> to vector<16x128xf32>
    %13 = arith.addf %11, %12 : vector<16x128xf32>
    %cst_6 = arith.constant 0.000000e+00 : f32
    %14 = vector.broadcast %cst_6 : f32 to vector<16x128xf32>
    %15 = arith.maximumf %13, %14 : vector<16x128xf32>
    %16 = arith.mulf %15, %10 : vector<16x128xf32>
    %17 = arith.mulf %0, %16 : vector<16x128xf32>
    %18 = arith.select %7, %17, %15 : vector<16x128xi1>, vector<16x128xf32>
    %c0_7 = arith.constant 0 : index
    %c0_8 = arith.constant 0 : index
    %19 = vector.load %arg5[%c0_7, %c0_8] : memref<16x128xf32, #tpu.memory_space<vmem>>, vector<16x128xf32>
    tpu.vector_store %arg5[%c0_7, %c0_8], %18 {strides = array<i32>} : memref<16x128xf32, #tpu.memory_space<vmem>>, vector<16x128xf32>,
    %20 = arith.mulf %1, %16 : vector<16x128xf32>
    %cst_9 = arith.constant 0.000000e+00 : f32
    %21 = vector.broadcast %cst_9 : f32 to vector<16x128xf32>
    %22 = arith.select %7, %20, %21 : vector<16x128xi1>, vector<16x128xf32>
    %c0_10 = arith.constant 0 : index
    %c0_11 = arith.constant 0 : index
    %23 = vector.load %arg6[%c0_10, %c0_11] : memref<16x128xf32, #tpu.memory_space<vmem>>, vector<16x128xf32>
    tpu.vector_store %arg6[%c0_10, %c0_11], %22 {strides = array<i32>} : memref<16x128xf32, #tpu.memory_space<vmem>>, vector<16x128xf32>,
    return
  }
  func.func @transform_0(%arg0: i32, %arg1: i32) -> (i32, i32) {
    %c0_i32 = arith.constant 0 : i32
    return %arg0, %arg1 : i32, i32
  }
  func.func @transform_1(%arg0: i32, %arg1: i32) -> (i32, i32) {
    %c0_i32 = arith.constant 0 : i32
    return %arg0, %arg1 : i32, i32
  }
  func.func @transform_2(%arg0: i32, %arg1: i32) -> (i32, i32) {
    %c0_i32 = arith.constant 0 : i32
    %c0_i32_0 = arith.constant 0 : i32
    return %c0_i32, %arg1 : i32, i32
  }
  func.func @transform_3(%arg0: i32, %arg1: i32) -> (i32, i32) {
    %c0_i32 = arith.constant 0 : i32
    return %arg0, %arg1 : i32, i32
  }
  func.func @transform_4(%arg0: i32, %arg1: i32) -> (i32, i32) {
    %c0_i32 = arith.constant 0 : i32
    return %arg0, %arg1 : i32, i32
  }
}

</mosaic_0001>

<bundles_post_ra>
// kernel: modrelu_planar.1
= control target key start
LH: loop header
LB: loop body
LE: loop exit
PB: predicated region body
PF: predicated region fallthrough
CT: control target
= control target key end

     0   :  { %10 = vsyncpa [#allocation3], 0  ;;  %s286_s0 = inlined_call_operand.hbm [shape: f32[16,128], index: 0, kind: input, shape index: {}]   ;;  %s287_s1 = inlined_call_operand.hbm [shape: f32[16,128], index: 1, kind: input, shape index: {}]   ;;  %s288_s2 = inlined_call_operand.vmem [shape: f32[1,128], index: 2, kind: input, shape index: {}]   ;;  %s289_s3 = inlined_call_operand.hbm [shape: f32[16,128], index: 3, kind: output, shape index: {0}]   ;;  %s290_s4 = inlined_call_operand.hbm [shape: f32[16,128], index: 4, kind: output, shape index: {1}]  }
   0x1   :  { %11 = vsyncpa [#allocation6], 0 }
   0x2   :  { %12 = vsyncpa [#allocation4], 0 }
   0x3   :  { %13 = vsyncpa [#allocation9], 0  ;;  %s222_s15 = smov [#allocation2]  }
   0x4   :  { %s19_s16 = sshll.u32 %s222_s15, 4  ;;  %s20_s16 = int_to_ptr.vmem [resolvable:$true] %s19_s16 }
   0x5   :  { %s142_s17 = scalar_lea.vmem %s20_s16, 256  ;;  %p147_p1 = scmp.lt.s32.totalorder %s20_s16, %s20_s16 }
   0x6   :  { %p143_p0 = scmp.ne.s32.totalorder %s20_s16, %s142_s17  ;;  %p148_p2 = scmp.lt.s32.totalorder %s142_s17, %s142_s17 }
   0x8   :  { %p149_p3 = por %p148_p2, %p147_p1 }
   0xa   :  { %p150_p4 = pnand %p149_p3, %p143_p0 }
   0xc   :  { %153 = shalt.err (!%p150_p4)
}
   0xd   :  { %s223_s18 = smov 128   ;;  %s224_s19 = smov 8  }
   0xe   :  { %25 = dma.hbm_to_vmem [thread:$0]  %s286_s0, 256, %s20_s16, [#allocation3], %s223_s18, %s223_s18, %s224_s19  }
   0xf   :  { %s225_s22 = smov [#allocation5]  }
  0x10   :  { %s31_s23 = sshll.u32 %s225_s22, 4  ;;  %s32_s23 = int_to_ptr.vmem [resolvable:$true] %s31_s23 }
  0x11   :  { %s162_s24 = scalar_lea.vmem %s32_s23, 256  ;;  %p167_p6 = scmp.lt.s32.totalorder %s32_s23, %s32_s23 }
  0x12   :  { %p163_p5 = scmp.ne.s32.totalorder %s32_s23, %s162_s24  ;;  %p168_p7 = scmp.lt.s32.totalorder %s162_s24, %s162_s24 }
  0x14   :  { %p169_p8 = por %p168_p7, %p167_p6 }
  0x16   :  { %p170_p9 = pnand %p169_p8, %p163_p5 }
  0x18   :  { %173 = shalt.err (!%p170_p9)
}
  0x19   :  { %37 = dma.hbm_to_vmem [thread:$0]  %s287_s1, 256, %s32_s23, [#allocation6], %s223_s18, %s223_s18, %s224_s19  }
  0x1a   :  { %214 = dma.done.wait [#allocation3], 256  }
  0x1b   :  { %215 = vsyncadd [#allocation3], 4294967040 }
  0x1c   :  { %216 = dma.done.wait [#allocation6], 256  }
  0x1d   :  { %217 = vsyncadd [#allocation6], 4294967040  ;;  %v46_v0 = vld [vmem:[#allocation2] sm:$0xff]  ;;  %v48_v1 = vld [vmem:[#allocation5] sm:$0xff]  ;;  %s226_s27 = smov [#allocation7]   ;;  %s227_s29 = smov [#allocation8]  }
  0x1e   :  { %v51_v2 = vmul.f32 %v46_v0, %v46_v0  ;;  %v53_v3 = vmul.f32 %v48_v1, %v48_v1  ;;  %v47_v4 = vld [vmem:[#allocation2 + $0x8] sm:$0xff]  ;;  %v49_v5 = vld [vmem:[#allocation5 + $0x8] sm:$0xff]  ;;  %v123_v13 = vld [vmem:[%s288_s2] ss:$0 sm:$0xff]  ;;  %s94_s28 = sshll.u32 %s226_s27, 4  ;;  %s106_s30 = sshll.u32 %s227_s29, 4  ;;  %s95_s28 = int_to_ptr.vmem [resolvable:$true] %s94_s28  ;;  %s107_s30 = int_to_ptr.vmem [resolvable:$true] %s106_s30 }
  0x1f   :  { %v52_v6 = vmul.f32 %v47_v4, %v47_v4  ;;  %v54_v7 = vmul.f32 %v49_v5, %v49_v5  ;;  %s174_s2 = scalar_lea.vmem %s95_s28, 256  ;;  %p179_p11 = scmp.lt.s32.totalorder %s95_s28, %s95_s28 }
  0x20   :  { %v55_v8 = vadd.f32 %v53_v3, %v51_v2  ;;  %p175_p10 = scmp.ne.s32.totalorder %s95_s28, %s174_s2  ;;  %p180_p12 = scmp.lt.s32.totalorder %s174_s2, %s174_s2 }
  0x21   :  { %v56_v9 = vadd.f32 %v54_v7, %v52_v6 }
  0x22   :  { %vm57_vm0 = vcmp.gt.f32.partialorder %v55_v8, 0.0  ;;  %p181_p13 = por %p180_p12, %p179_p11 }
  0x23   :  { %v59_v10 = vsel %vm57_vm0, %v55_v8, 1.0  ;;  %vm58_vm1 = vcmp.gt.f32.partialorder %v56_v9, 0.0 }
  0x24   :  { %130 = vrsqrt.f32 %v59_v10  ;;  %v60_v11 = vsel %vm58_vm1, %v56_v9, 1.0  ;;  %p182_p0 = pnand %p181_p13, %p175_p10 }
  0x25   :  { %132 = vrsqrt.f32 %v60_v11 }
  0x31   :  { %v131_v12 = vpop.eup %130 }
  0x32   :  { %v133_v14 = vpop.eup %132  ;;  %v63_v15 = vmul.f32 %v131_v12, %v55_v8 }
  0x33   :  { %v64_v16 = vmul.f32 %v133_v14, %v56_v9 }
  0x34   :  { %v71_v17 = vadd.f32 %v123_v13, %v63_v15 }
  0x35   :  { %v72_v18 = vadd.f32 %v123_v13, %v64_v16 }
  0x36   :  { %v73_v19 = vmax.f32 %v71_v17, 0.0 }
  0x37   :  { %v74_v20 = vmax.f32 %v72_v18, 0.0 }
  0x38   :  { %v75_v21 = vmul.f32 %v131_v12, %v73_v19 }
  0x39   :  { %v76_v22 = vmul.f32 %v133_v14, %v74_v20 }
  0x3a   :  { %v77_v23 = vmul.f32 %v75_v21, %v46_v0  ;;  %v83_v24 = vmul.f32 %v75_v21, %v48_v1 }
  0x3b   :  { %v78_v25 = vmul.f32 %v76_v22, %v47_v4  ;;  %v84_v26 = vmul.f32 %v76_v22, %v49_v5 }
  0x3c   :  { %v79_v27 = vsel %vm57_vm0, %v77_v23, %v73_v19  ;;  %v85_v28 = vsel %vm57_vm0, %v83_v24, 0.0 }
  0x3d   :  { %81 = vst [vmem:[#allocation7] sm:$0xff] %v79_v27  ;;  %v80_v29 = vsel %vm58_vm1, %v78_v25, %v74_v20  ;;  %87 = vst [vmem:[#allocation8] sm:$0xff] %v85_v28  ;;  %v86_v30 = vsel %vm58_vm1, %v84_v26, 0.0 }
  0x3e   :  { %82 = vst [vmem:[#allocation7 + $0x8] sm:$0xff] %v80_v29  ;;  %88 = vst [vmem:[#allocation8 + $0x8] sm:$0xff] %v86_v30 }
  0x3f   :  { %185 = shalt.err (!%p182_p0)
}
  0x40   :  { %100 = dma.vmem_to_hbm [thread:$0]  %s95_s28, 256, %s289_s3, [#allocation4], %s223_s18, %s223_s18, %s224_s19  }
  0x41   :  { %s194_s7 = scalar_lea.vmem %s107_s30, 256  ;;  %p199_p2 = scmp.lt.s32.totalorder %s107_s30, %s107_s30 }
  0x42   :  { %p195_p1 = scmp.ne.s32.totalorder %s107_s30, %s194_s7  ;;  %p200_p3 = scmp.lt.s32.totalorder %s194_s7, %s194_s7 }
  0x44   :  { %p201_p4 = por %p200_p3, %p199_p2 }
  0x46   :  { %p202_p5 = pnand %p201_p4, %p195_p1 }
  0x48   :  { %205 = shalt.err (!%p202_p5)
}
  0x49   :  { %112 = dma.vmem_to_hbm [thread:$0]  %s107_s30, 256, %s290_s4, [#allocation9], %s223_s18, %s223_s18, %s224_s19  }
  0x4a   :  { %218 = dma.done.wait [#allocation4], 256  }
  0x4b   :  { %219 = vsyncadd [#allocation4], 4294967040 }
  0x4c   :  { %220 = dma.done.wait [#allocation9], 256  }
  0x4d   :  { %221 = vsyncadd [#allocation9], 4294967040 }
  0x4e   :  { %119 = vsyncpa [#allocation3], 1 }
  0x4f   :  { %120 = vsyncpa [#allocation6], 1 }
  0x50   :  { %121 = vsyncpa [#allocation4], 1 }
  0x51   :  { %122 = vsyncpa [#allocation9], 1 }

</bundles_post_ra>
